<compile_context>
chip_gen: v7x
topology: tpu7x:2x2x1
jax: 0.10.0
libtpu: 0.0.40
codegen_flags: <defaults>
</compile_context>

<pallas_src>
import jax
import jax.numpy as jnp
from jax.experimental import pallas as pl
from jax.experimental.pallas import tpu as pltpu


# ---------------------------------------------------------------------------
# Fused kernel: global avg + max pooling over spatial axis, then shared MLP
# (two 1x1 convs) + sigmoid in the finalize of the last spatial step.
# ---------------------------------------------------------------------------
def _make_fused_kernel(hw_total, hw_tile, c):
    needs_mask = (hw_total % hw_tile) != 0
    inv_hw = 1.0 / float(hw_total)

    def kernel(x_ref, w1_ref, w2_ref, o_ref, sum_sc, max_sc):
        # x_ref:  (C, hw_tile)   one batch element, spatial on lanes
        # w1_ref: (Cr, C)        fc[0].weight (resident, fetched once)
        # w2_ref: (C, Cr)        fc[2].weight (resident, fetched once)
        # o_ref:  (C, 1)         sigmoid(fc(avg)+fc(max)), written at k==last
        # sum_sc / max_sc: (C, 1) f32 running accumulators (VMEM scratch)
        k = pl.program_id(1)
        last = pl.num_programs(1) - 1

        @pl.when(k == 0)
        def _():
            sum_sc[...] = jnp.zeros_like(sum_sc)
            max_sc[...] = jnp.full_like(max_sc, -jnp.inf)

        def accumulate(x_sum, x_max):
            # f32 accumulation fused into the reduce; max stays native then casts.
            sum_sc[...] += jnp.sum(x_sum, axis=1, keepdims=True, dtype=jnp.float32)
            max_sc[...] = jnp.maximum(
                max_sc[...],
                jnp.max(x_max, axis=1, keepdims=True).astype(jnp.float32))

        if needs_mask:
            # Fast path: every full tile, no mask work on the VPU.
            @pl.when(k != last)
            def _():
                x = x_ref[...]
                accumulate(x, x)

            # Only the tail tile pays for iota + compare + selects.
            @pl.when(k == last)
            def _():
                x = x_ref[...]
                col = jax.lax.broadcasted_iota(jnp.int32, (c, hw_tile), 1)
                valid = (k * hw_tile + col) < hw_total
                accumulate(jnp.where(valid, x, jnp.zeros((), x.dtype)),
                           jnp.where(valid, x, jnp.full((), -jnp.inf, x.dtype)))
        else:
            x = x_ref[...]
            accumulate(x, x)

        # Finalize: shared MLP + sigmoid on the pooled (C, 1) columns.
        @pl.when(k == last)
        def _():
            avg_col = sum_sc[...] * inv_hw                    # (C, 1) f32
            max_col = max_sc[...]                             # (C, 1) f32
            w1 = w1_ref[...].astype(jnp.float32)              # (Cr, C)
            w2 = w2_ref[...].astype(jnp.float32)              # (C, Cr)
            h_avg = jnp.maximum(
                jnp.dot(w1, avg_col, preferred_element_type=jnp.float32), 0.0)
            h_max = jnp.maximum(
                jnp.dot(w1, max_col, preferred_element_type=jnp.float32), 0.0)
            out = jnp.dot(w2, h_avg + h_max,
                          preferred_element_type=jnp.float32)  # (C, 1)
            o_ref[...] = jax.nn.sigmoid(out).astype(o_ref.dtype)

    return kernel


# ---------------------------------------------------------------------------
# Generation-aware spatial tile choice.
# ---------------------------------------------------------------------------
def _vmem_capacity_bytes():
    try:
        return int(pltpu.get_tpu_info().vmem_capacity_bytes)
    except Exception:
        return 128 * 1024 * 1024   # v5e/v6e-class fallback


def _pick_hw_tile(hw_total, c, itemsize):
    """Largest multiple-of-128 spatial tile whose x block fits the per-gen target."""
    if hw_total <= 128:
        return hw_total                          # full extent; no (8,128) issue
    if _vmem_capacity_bytes() <= 64 * 1024 * 1024:
        target_bytes = 10 * 1024 * 1024          # v7x-class: 64 MiB physical VMEM
    else:
        target_bytes = 8 * 1024 * 1024           # v5e / v6e: 128 MiB physical
    t = max(128, (target_bytes // max(1, c * itemsize)) // 128 * 128)
    return min(t, max(128, (hw_total // 128) * 128))


# ---------------------------------------------------------------------------
# Public wrapper
# ---------------------------------------------------------------------------
def channel_attention(x, w1, w2, hw_tile=None):
    """x: (B, C, H, W) NCHW.  w1: (Cr, C), w2: (C, Cr).  Returns (B, C, 1, 1)."""
    assert jnp.issubdtype(x.dtype, jnp.floating), "masked max uses -inf fill"
    B, C, H, W = x.shape
    Cr = w1.shape[0]
    HW = H * W
    # Free reshape: H, W are innermost/contiguous in NCHW, so no data movement.
    x_l = x.reshape(B, C, HW)
    if hw_tile is None:
        hw_tile = _pick_hw_tile(HW, C, x.dtype.itemsize)
    num_k = pl.cdiv(HW, hw_tile)

    block_bytes = C * hw_tile * x.dtype.itemsize
    vmem_limit = int(2 * block_bytes + (4 << 20))   # double buffer + slack

    kernel = _make_fused_kernel(HW, hw_tile, C)
    out = pl.pallas_call(
        kernel,
        out_shape=jax.ShapeDtypeStruct((B, C, 1), x.dtype),
        grid_spec=pltpu.PrefetchScalarGridSpec(
            num_scalar_prefetch=0,
            grid=(B, num_k),                       # reduction axis last
            in_specs=[
                # Batch dim squeezed; kernel sees (C, hw_tile).
                pl.BlockSpec((None, C, hw_tile), lambda b, k: (b, 0, k)),
                # Tiny weights, constant index -> fetched once, stay resident.
                pl.BlockSpec((Cr, C), lambda b, k: (0, 0)),
                pl.BlockSpec((C, Cr), lambda b, k: (0, 0)),
            ],
            out_specs=pl.BlockSpec((None, C, 1), lambda b, k: (b, 0, 0)),
            scratch_shapes=[pltpu.VMEM((C, 1), jnp.float32),
                            pltpu.VMEM((C, 1), jnp.float32)]),
        compiler_params=pltpu.CompilerParams(
            dimension_semantics=("parallel", "arbitrary"),
            vmem_limit_bytes=vmem_limit),
    )(x_l, w1, w2)
    return out.reshape(B, C, 1, 1)


def channel_attention_ref(x, w1, w2):
    """Pure-JAX reference replicating the PyTorch forward."""
    avg = jnp.mean(x, axis=(2, 3))  # (B, C)
    mx = jnp.max(x, axis=(2, 3))    # (B, C)

    def fc(v):
        h = jnp.maximum(v @ w1.T, 0.0)  # (B, Cr)
        return h @ w2.T                 # (B, C)

    out = jax.nn.sigmoid(fc(avg) + fc(mx))
    B, C = out.shape
    return out.reshape(B, C, 1, 1)


if __name__ == "__main__":
    key = jax.random.PRNGKey(0)
    kx, k1, k2, kx2, kx3 = jax.random.split(key, 5)

    # in_planes must be >= 16 because the module hardcodes in_planes // 16.
    B, C, H, W = 2, 32, 16, 16
    Cr = C // 16

    x = jax.random.normal(kx, (B, C, H, W), dtype=jnp.float32)
    # fc[0].weight: (Cr, C, 1, 1) -> (Cr, C); fc[2].weight: (C, Cr, 1, 1) -> (C, Cr)
    w1 = jax.random.normal(k1, (Cr, C), dtype=jnp.float32) * 0.1
    w2 = jax.random.normal(k2, (C, Cr), dtype=jnp.float32) * 0.1

    # hw_tile=128 forces >1 step on the spatial reduction axis (HW = 256),
    # exercising the unmasked fast path + resident accumulator.
    out = jax.block_until_ready(channel_attention(x, w1, w2, hw_tile=128))
    ref = channel_attention_ref(x, w1, w2)
    assert out.shape == (B, C, 1, 1)
    assert jnp.allclose(out, ref, atol=1e-5, rtol=1e-5)

    # Non-multiple-of-128 spatial extent (12x12 -> HW=144): masked tail tile
    # for both sum and max (only the last step runs the masked path).
    x2 = jax.random.normal(kx2, (B, C, 12, 12), dtype=jnp.float32)
    out2 = jax.block_until_ready(channel_attention(x2, w1, w2))
    ref2 = channel_attention_ref(x2, w1, w2)
    assert jnp.allclose(out2, ref2, atol=1e-5, rtol=1e-5)

    # Small spatial extent (8x8 -> HW=64 <= 128): single full-extent tile.
    x3 = jax.random.normal(kx3, (B, C, 8, 8), dtype=jnp.float32)
    out3 = jax.block_until_ready(channel_attention(x3, w1, w2))
    ref3 = channel_attention_ref(x3, w1, w2)
    assert jnp.allclose(out3, ref3, atol=1e-5, rtol=1e-5)

    print("KERNEL_OK")
</pallas_src>

<mosaic_0001>
module attributes {stable_mosaic.version = 11 : i64} {
  func.func @kernel(%arg0: i32, %arg1: i32, %arg2: memref<1x32x128xf32, #tpu.memory_space<vmem>>, %arg3: memref<2x32xf32, #tpu.memory_space<vmem>>, %arg4: memref<32x2xf32, #tpu.memory_space<vmem>>, %arg5: memref<1x32x1xf32, #tpu.memory_space<vmem>>, %arg6: memref<32x1xf32, #tpu.memory_space<vmem>>, %arg7: memref<32x1xf32, #tpu.memory_space<vmem>>) attributes {dimension_semantics = [#tpu.dimension_semantics<parallel>, #tpu.dimension_semantics<arbitrary>], iteration_bounds = array<i64: 2, 2>, scalar_prefetch = 0 : i64, scratch_operands = 2 : i64, tpu.core_type = #tpu.core_type<tc>, window_params = [{transform_indices = @transform_0, window_bounds = array<i64: 1, 32, 128>}, {pipeline_mode = #tpu.pipeline_mode<synchronous>, transform_indices = @transform_1, window_bounds = array<i64: 2, 32>}, {pipeline_mode = #tpu.pipeline_mode<synchronous>, transform_indices = @transform_2, window_bounds = array<i64: 32, 2>}, {transform_indices = @transform_3, window_bounds = array<i64: 1, 32, 1>}]} {
    %c0_i32 = arith.constant 0 : i32
    %0 = arith.cmpi eq, %arg1, %c0_i32 : i32
    %1 = arith.extui %0 : i1 to i32
    %c0_i32_0 = arith.constant 0 : i32
    %2 = arith.cmpi ne, %1, %c0_i32_0 : i32
    scf.if %2 {
      %cst_13 = arith.constant 0.000000e+00 : f32
      %18 = vector.broadcast %cst_13 : f32 to vector<32x1xf32>
      %c0_14 = arith.constant 0 : index
      %c0_15 = arith.constant 0 : index
      %19 = vector.load %arg6[%c0_14, %c0_15] : memref<32x1xf32, #tpu.memory_space<vmem>>, vector<32x1xf32>
      tpu.vector_store %arg6[%c0_14, %c0_15], %18 {strides = array<i32>} : memref<32x1xf32, #tpu.memory_space<vmem>>, vector<32x1xf32>,
      %cst_16 = arith.constant 0xFF800000 : f32
      %20 = vector.broadcast %cst_16 : f32 to vector<32x1xf32>
      %c0_17 = arith.constant 0 : index
      %c0_18 = arith.constant 0 : index
      %21 = vector.load %arg7[%c0_17, %c0_18] : memref<32x1xf32, #tpu.memory_space<vmem>>, vector<32x1xf32>
      tpu.vector_store %arg7[%c0_17, %c0_18], %20 {strides = array<i32>} : memref<32x1xf32, #tpu.memory_space<vmem>>, vector<32x1xf32>,
    } else {
    }
    %c0 = arith.constant 0 : index
    %c0_1 = arith.constant 0 : index
    %c0_2 = arith.constant 0 : index
    %3 = vector.load %arg2[%c0, %c0_1, %c0_2] : memref<1x32x128xf32, #tpu.memory_space<vmem>>, vector<1x32x128xf32>
    %4 = vector.shape_cast %3 : vector<1x32x128xf32> to vector<32x128xf32>
    %c0_3 = arith.constant 0 : index
    %c0_4 = arith.constant 0 : index
    %5 = vector.load %arg6[%c0_3, %c0_4] : memref<32x1xf32, #tpu.memory_space<vmem>>, vector<32x1xf32>
    %cst = arith.constant dense<0.000000e+00> : vector<32xf32>
    %6 = vector.multi_reduction <add>, %4, %cst [1] : vector<32x128xf32> to vector<32xf32>
    %7 = vector.shape_cast %6 : vector<32xf32> to vector<32x1xf32>
    %8 = arith.addf %5, %7 : vector<32x1xf32>
    %c0_5 = arith.constant 0 : index
    %c0_6 = arith.constant 0 : index
    %9 = vector.load %arg6[%c0_5, %c0_6] : memref<32x1xf32, #tpu.memory_space<vmem>>, vector<32x1xf32>
    tpu.vector_store %arg6[%c0_5, %c0_6], %8 {strides = array<i32>} : memref<32x1xf32, #tpu.memory_space<vmem>>, vector<32x1xf32>,
    %c0_7 = arith.constant 0 : index
    %c0_8 = arith.constant 0 : index
    %10 = vector.load %arg7[%c0_7, %c0_8] : memref<32x1xf32, #tpu.memory_space<vmem>>, vector<32x1xf32>
    %cst_9 = arith.constant dense<0xFF800000> : vector<32xf32>
    %11 = vector.multi_reduction <maximumf>, %4, %cst_9 [1] : vector<32x128xf32> to vector<32xf32>
    %12 = vector.shape_cast %11 : vector<32xf32> to vector<32x1xf32>
    %13 = arith.maximumf %10, %12 : vector<32x1xf32>
    %c0_10 = arith.constant 0 : index
    %c0_11 = arith.constant 0 : index
    %14 = vector.load %arg7[%c0_10, %c0_11] : memref<32x1xf32, #tpu.memory_space<vmem>>, vector<32x1xf32>
    tpu.vector_store %arg7[%c0_10, %c0_11], %13 {strides = array<i32>} : memref<32x1xf32, #tpu.memory_space<vmem>>, vector<32x1xf32>,
    %c1_i32 = arith.constant 1 : i32
    %15 = arith.cmpi eq, %arg1, %c1_i32 : i32
    %16 = arith.extui %15 : i1 to i32
    %c0_i32_12 = arith.constant 0 : i32
    %17 = arith.cmpi ne, %16, %c0_i32_12 : i32
    scf.if %17 {
      %c0_13 = arith.constant 0 : index
      %c0_14 = arith.constant 0 : index
      %18 = vector.load %arg6[%c0_13, %c0_14] : memref<32x1xf32, #tpu.memory_space<vmem>>, vector<32x1xf32>
      %cst_15 = arith.constant 3.906250e-03 : f32
      %19 = vector.broadcast %cst_15 : f32 to vector<32x1xf32>
      %20 = arith.mulf %18, %19 : vector<32x1xf32>
      %c0_16 = arith.constant 0 : index
      %c0_17 = arith.constant 0 : index
      %21 = vector.load %arg7[%c0_16, %c0_17] : memref<32x1xf32, #tpu.memory_space<vmem>>, vector<32x1xf32>
      %c0_18 = arith.constant 0 : index
      %c0_19 = arith.constant 0 : index
      %22 = vector.load %arg3[%c0_18, %c0_19] : memref<2x32xf32, #tpu.memory_space<vmem>>, vector<2x32xf32>
      %c0_20 = arith.constant 0 : index
      %c0_21 = arith.constant 0 : index
      %23 = vector.load %arg4[%c0_20, %c0_21] : memref<32x2xf32, #tpu.memory_space<vmem>>, vector<32x2xf32>
      %cst_22 = arith.constant dense<0.000000e+00> : vector<2x1xf32>
      %24 = tpu.matmul %22, %20, %cst_22 {dimension_numbers = #tpu.dot_dimension_numbers<[1], [0], [0], [1], [0, 0, 1, 1], [], []>} : vector<2x32xf32>, vector<32x1xf32>, vector<2x1xf32> -> vector<2x1xf32>
      %cst_23 = arith.constant 0.000000e+00 : f32
      %25 = vector.broadcast %cst_23 : f32 to vector<2x1xf32>
      %26 = arith.maximumf %24, %25 : vector<2x1xf32>
      %cst_24 = arith.constant dense<0.000000e+00> : vector<2x1xf32>
      %27 = tpu.matmul %22, %21, %cst_24 {dimension_numbers = #tpu.dot_dimension_numbers<[1], [0], [0], [1], [0, 0, 1, 1], [], []>} : vector<2x32xf32>, vector<32x1xf32>, vector<2x1xf32> -> vector<2x1xf32>
      %cst_25 = arith.constant 0.000000e+00 : f32
      %28 = vector.broadcast %cst_25 : f32 to vector<2x1xf32>
      %29 = arith.maximumf %27, %28 : vector<2x1xf32>
      %30 = arith.addf %26, %29 : vector<2x1xf32>
      %cst_26 = arith.constant dense<0.000000e+00> : vector<32x1xf32>
      %31 = tpu.matmul %23, %30, %cst_26 {dimension_numbers = #tpu.dot_dimension_numbers<[1], [0], [0], [1], [0, 0, 1, 1], [], []>} : vector<32x2xf32>, vector<2x1xf32>, vector<32x1xf32> -> vector<32x1xf32>
      %32 = arith.negf %31 : vector<32x1xf32>
      %33 = math.exp %32 : vector<32x1xf32>
      %cst_27 = arith.constant 1.000000e+00 : f32
      %34 = vector.broadcast %cst_27 : f32 to vector<32x1xf32>
      %35 = arith.addf %34, %33 : vector<32x1xf32>
      %36 = arith.divf %34, %35 : vector<32x1xf32>
      %c0_28 = arith.constant 0 : index
      %c0_29 = arith.constant 0 : index
      %c0_30 = arith.constant 0 : index
      %37 = vector.load %arg5[%c0_28, %c0_29, %c0_30] : memref<1x32x1xf32, #tpu.memory_space<vmem>>, vector<1x32x1xf32>
      %38 = vector.shape_cast %37 : vector<1x32x1xf32> to vector<32x1xf32>
      %39 = vector.shape_cast %36 : vector<32x1xf32> to vector<1x32x1xf32>
      tpu.vector_store %arg5[%c0_28, %c0_29, %c0_30], %39 {strides = array<i32>} : memref<1x32x1xf32, #tpu.memory_space<vmem>>, vector<1x32x1xf32>,
    } else {
    }
    return
  }
  func.func @transform_0(%arg0: i32, %arg1: i32) -> (i32, i32, i32) {
    %c0_i32 = arith.constant 0 : i32
    %c0_i32_0 = arith.constant 0 : i32
    return %arg0, %c0_i32, %arg1 : i32, i32, i32
  }
  func.func @transform_1(%arg0: i32, %arg1: i32) -> (i32, i32) {
    %c0_i32 = arith.constant 0 : i32
    %c0_i32_0 = arith.constant 0 : i32
    %c0_i32_1 = arith.constant 0 : i32
    return %c0_i32, %c0_i32_0 : i32, i32
  }
  func.func @transform_2(%arg0: i32, %arg1: i32) -> (i32, i32) {
    %c0_i32 = arith.constant 0 : i32
    %c0_i32_0 = arith.constant 0 : i32
    %c0_i32_1 = arith.constant 0 : i32
    return %c0_i32, %c0_i32_0 : i32, i32
  }
  func.func @transform_3(%arg0: i32, %arg1: i32) -> (i32, i32, i32) {
    %c0_i32 = arith.constant 0 : i32
    %c0_i32_0 = arith.constant 0 : i32
    %c0_i32_1 = arith.constant 0 : i32
    return %arg0, %c0_i32, %c0_i32_0 : i32, i32, i32
  }
}

</mosaic_0001>

<bundles_post_ra>
// kernel: tpu_custom_call.1
= control target key start
LH: loop header
LB: loop body
LE: loop exit
PB: predicated region body
PF: predicated region fallthrough
CT: control target
= control target key end

     0   :  { %8 = vsyncpa [#allocation5], 0  ;;  %s1140_s0 = inlined_call_operand.hbm [shape: f32[2,32,256], index: 0, kind: input, shape index: {}]   ;;  %s1141_s1 = inlined_call_operand.vmem [shape: f32[2,32], index: 1, kind: input, shape index: {}]   ;;  %s1142_s2 = inlined_call_operand.vmem [shape: f32[32,2], index: 2, kind: input, shape index: {}]   ;;  %s1143_s3 = inlined_call_operand.vmem [shape: f32[2,32,1], index: 3, kind: output, shape index: {}]  }
   0x1   :  { %10 = vsyncpa [#allocation5 + $0x1], 0  ;;  %s950_s12 = smov 0   ;;  %s952_s13 = smov 0  }
   0x2   :  { %s954_s14 = smov 0   ;;  %s956_s15 = smov 0  }
   0x3   :  { %s958_s16 = smov 0   ;;  %s960_s17 = smov 0  }
   0x4   :  { %s962_s18 = smov 0   ;;  %s964_s19 = smov 0  }
   0x5 LB: > { %s642_s20 = sadd.s32 4294967295, %s919_s19   ;;  %s25_s21 = sadd.s32 1, %s911_s17  ;;  %s919_s19 = sphi %s964_s19, %s16_s19   ;;  %s915_s18 = sphi %s962_s18, %s1154_s18   ;;  %s911_s17 = sphi %s960_s17, %s1153_s17   ;;  %s907_s16 = sphi %s958_s16, %s1152_s16   ;;  %s903_s15 = sphi %s956_s15, %s1151_s15   ;;  %s899_s14 = sphi %s954_s14, %s1150_s14   ;;  %s895_s13 = sphi %s952_s13, %s1149_s13   ;;  %s891_s12 = sphi %s950_s12, %s1148_s12  }
   0x6   : > { %p26_p0 = scmp.ge.s32.totalorder %s25_s21, 2  ;;  %s28_s22 = sadd.s32 1, %s915_s18 }
   0x7   : > { %s37_s23 = sadd.s32 1, %s899_s14  ;;  %p44_p1 = scmp.ne.s32.totalorder %s899_s14, %s895_s13 }
   0x8   : > { %s1156_s21 = smov (%p26_p0, %s25_s21), 0  ;;  %s1158_s22 = smov (!%p26_p0, %s28_s22), %s915_s18 }
   0x9   : > { %s33_s24 = ssub.s32 %s911_s17, %s1156_s21  ;;  %p45_p2 = scmp.eq.s32.totalorder %s919_s19, 0 }
   0xa   : > { %p30_p3 = scmp.ge.s32.totalorder %s1158_s22, 2  ;;  %p50_p4 = scmp.ne.s32.totalorder %s895_s13, %s891_s12 }
   0xb   : > { %p1001_p5 = por %p45_p2, %p44_p1  ;;  %p51_p6 = scmp.eq.s32.totalorder %s642_s20, 0 }
   0xc   : > { %s1160_s22 = smov (%p30_p3, %s1158_s22), 0  ;;  %p734_p8 = scmp.lt.s32.totalorder %s919_s19, 4 }
   0xd   : > { %p1007_p7 = por %p51_p6, %p50_p4  ;;  %s32_s27 = ssub.s32 %s915_s18, %s1160_s22 }
   0xe   : > { %s34_s28 = sor.u32 %s33_s24, %s32_s27  ;;  %s148_s29 = sand.u32 1, %s899_s14  }
   0xf   : > { %p35_p9 = scmp.eq.s32.totalorder %s34_s28, 0  ;;  %s646_s30 = sshll.u32 %s148_s29, 5 }
  0x10   : > { %s647_s4 = sshll.u32 %s915_s18, 3  ;;  %s152_s8 = scalar_lea.vmem [#allocation4], %s646_s30 }
  0x11   : > { %s1017_s5 = scalar_select %p35_p9, %s899_s14, %s37_s23  }
  0x12   : > { %s157_s6 = sadd.s32 %s911_s17, %s647_s4  ;;  %s160_s9 = sshll.u32 %s152_s8, 4  ;;  %s1025_s9 = int_to_ptr.vmem [resolvable:$true] %s160_s9 }
  0x13   : > { %s648_s7 = sshll.u32 %s157_s6, 7  ;;  %p1031_p10 = pnand %p734_p8, %p1001_p5 }
  0x14   : > { %s1023_s12 = scalar_lea.hbm %s1140_s0, %s648_s7  ;;  %s1036_s23 = scalar_lea.sflag [#allocation5], %s148_s29 }
  0x15   : > { %s823_s24 = scalar_lea.hbm %s1023_s12, 512  ;;  %p825_p13 = pneg %p1031_p10 }
  0x16   : > { %p824_p12 = scmp.ne.s32.totalorder %s1023_s12, %s823_s24  ;;  %s828_s28 = scalar_lea.hbm %s1140_s0, 2048 }
  0x17   : > { %p829_p2 = scmp.lt.u32.totalorder %s1023_s12, %s1140_s0  ;;  %p830_p3 = scmp.lt.u32.totalorder %s828_s28, %s823_s24 }
  0x18   : > { %p826_p0 = pnand %p825_p13, %p824_p12  ;;  %p832_p5 = scmp.lt.u32.totalorder %s823_s24, %s1023_s12 }
  0x19   : > { %p831_p4 = por %p830_p3, %p829_p2 }
  0x1a   : > { %p827_p1 = pneg %p826_p0 }
  0x1b   : > { %p833_p6 = por %p832_p5, %p831_p4 }
  0x1d   : > { %p834_p8 = pnand %p833_p6, %p827_p1 }
  0x1f   : > { %837 = shalt.err (!%p834_p8)
}
  0x20   : > { %s838_s29 = scalar_lea.vmem %s1025_s9, 512  ;;  %s921_s6 = smov [#allocation4]  }
  0x21   : > { %p839_p9 = scmp.ne.s32.totalorder %s1025_s9, %s838_s29  ;;  %s843_s7 = sshll.u32 %s921_s6, 4  ;;  %s844_s7 = int_to_ptr.vmem [resolvable:$false] %s843_s7 }
  0x22   : > { %s845_s8 = scalar_lea.vmem %s844_s7, 1024  ;;  %p846_p11 = scmp.lt.s32.totalorder %s1025_s9, %s844_s7 }
  0x23   : > { %p841_p12 = pnand %p839_p9, %p825_p13  ;;  %p847_p2 = scmp.lt.s32.totalorder %s845_s8, %s838_s29 }
  0x25   : > { %p842_p0 = pneg %p841_p12  ;;  %p848_p3 = por %p847_p2, %p846_p11 }
  0x27   : > { %p849_p4 = pnand %p848_p3, %p842_p0 }
  0x29   : > { %852 = shalt.err (!%p849_p4)
}
  0x2a   : > { %s922_s10 = smov 256   ;;  %s923_s11 = smov 128  }
  0x2b   : > { %s924_s24 = smov 8   ;;  %p168_p13 = scmp.lt.s32.totalorder %s919_s19, 5 }
  0x2c   : > { %733 = dma.hbm_to_vmem [thread:$0]  (!%p1031_p10), %s1023_s12, 512, %s1025_s9, %s1036_s23, %s922_s10, %s923_s11, %s924_s24  }
  0x2d   : > { %p1147_p1 = scmp.ge.s32.totalorder %s919_s19, 1 }
  0x2f   : > { %p169_p5 = pnand %p1147_p1, %p168_p13 }
  0x30   : > { %s174_s27 = sand.u32 (!%p169_p5), 1, %s895_s13  }
  0x31   : > { %172 = sbr.rel (%p169_p5) target bundleno = 696 (0x2b8), region = 32  ;;  %s650_s25 = sshll.u32 (!%p169_p5), %s174_s27, 5 }
  0x32   : > { %s175_s28 = scalar_lea.sflag (!%p169_p5), [#allocation5], %s174_s27  ;;  %s178_s30 = scalar_lea.vmem (!%p169_p5), [#allocation4], %s650_s25 }
  0x38   : > { %886 = dma.done.wait (%p1007_p7), %s175_s28, 512  }
  0x39   : > { %888 = vsyncadd (%p1007_p7), %s175_s28, 4294966784  ;;  %p201_p11 = scmp.lt.s32.totalorder %s907_s16, 1  ;;  %p653_p10 = scmp.ne.s32.totalorder %s903_s15, 0 }
  0x3a   : > { %vm210_vm0 = vcmask (!%p653_p10), 7168   ;;  %v925_v0 = vmov (!%p653_p10), 0.0   ;;  %v926_v1 = vmov (!%p653_p10), -inf  }
  0x3b   : > { %s1162_s16 = smov (!%p201_p11, %s907_s16), 1  ;;  %209 = sbr.rel (%p653_p10) target bundleno = 66 (0x42), region = 40 }
  0x3c   : > { %s668_s9 = sshll.u32 %s1162_s16, 5  ;;  %211 = vst.msk [vmem:[#allocation2] sm:$0xff] (!%p653_p10), %vm210_vm0, %v925_v0  ;;  %212 = vst.msk [vmem:[#allocation2 + $0x8] sm:$0xff] (!%p653_p10), %vm210_vm0, %v925_v0 }
  0x3d   : > { %s1077_s23 = scalar_lea.vmem %s1143_s3, %s668_s9  ;;  %213 = vst.msk [vmem:[#allocation2 + $0x10] sm:$0xff] (!%p653_p10), %vm210_vm0, %v925_v0  ;;  %214 = vst.msk [vmem:[#allocation2 + $0x18] sm:$0xff] (!%p653_p10), %vm210_vm0, %v925_v0 }
  0x3e   : > { %215 = vst.msk [vmem:[#allocation3] sm:$0xff] (!%p653_p10), %vm210_vm0, %v926_v1  ;;  %216 = vst.msk [vmem:[#allocation3 + $0x8] sm:$0xff] (!%p653_p10), %vm210_vm0, %v926_v1 }
  0x3f   : > { %217 = vst.msk [vmem:[#allocation3 + $0x10] sm:$0xff] (!%p653_p10), %vm210_vm0, %v926_v1  ;;  %218 = vst.msk [vmem:[#allocation3 + $0x18] sm:$0xff] (!%p653_p10), %vm210_vm0, %v926_v1 }
  0x42 PF: > { %v221_v2 = vld [vmem:[%s178_s30 + $0x10] sm:$0xff]  ;;  %v219_v3 = vld [vmem:[%s178_s30] sm:$0xff]  ;;  %v222_v4 = vld [vmem:[%s178_s30 + $0x18] sm:$0xff]  ;;  %vm239_vm1 = vcmask 7168   ;;  %p654_p7 = scmp.ne.s32.totalorder %s903_s15, 1 }
  0x43   : > { %231 = vadd.xlane.f32.xlu1 %v221_v2  ;;  %227 = vadd.xlane.f32.xlu0 %v219_v3  ;;  %v220_v5 = vld [vmem:[%s178_s30 + $0x8] sm:$0xff]  ;;  %v223_v7 = vld [vmem:[#allocation2] sm:$0xff]  ;;  %v927_v33 = vmov (!%p654_p7), 0.0|0.0   ;;  %vm928_vm2 = vmmov (!%p654_p7), 0   ;;  %v929_v42 = vmov (!%p654_p7), 0.0   ;;  %vm285_vm3 = vcmask (!%p654_p7), 261120  }
  0x44   : > { %v225_v6 = vld [vmem:[#allocation2 + $0x10] sm:$0xff]  ;;  %v226_v12 = vld [vmem:[#allocation2 + $0x18] sm:$0xff]  ;;  %v224_v13 = vld [vmem:[#allocation2 + $0x8] sm:$0xff]  ;;  %720 = vmatprep.subr.bf16.mxu1 (!%p654_p7), %v927_v33  ;;  %714 = vmatprep.subr.bf16.mxu0 (!%p654_p7), %v927_v33  ;;  %vm432_vm4 = vcmask (!%p654_p7), 15360   ;;  %vm445_vm5 = vcmask (!%p654_p7), 1041408  }
  0x45   : > { %v245_v18 = vld [vmem:[#allocation3 + $0x8] sm:$0xff]  ;;  %v244_v19 = vld [vmem:[#allocation3] sm:$0xff]  ;;  %703 = vmatprep.mubr.msk.f32.mxu1 (!%p654_p7), %vm928_vm2, %v929_v42  ;;  %692 = vmatprep.mubr.msk.f32.mxu0 (!%p654_p7), %vm928_vm2, %v929_v42  ;;  %v283_v50 = vld [vmem:[%s1142_s2 + $0x10] sm:$0xff] (!%p654_p7) }
  0x46   : > { %v247_v24 = vld [vmem:[#allocation3 + $0x18] sm:$0xff]  ;;  %v246_v25 = vld [vmem:[#allocation3 + $0x10] sm:$0xff]  ;;  %v280_v48 = vld [vmem:[%s1141_s1] sm:$0x3] (!%p654_p7) }
  0x47   : > { %233 = vadd.xlane.f32.xlu1 %v222_v4  ;;  %229 = vadd.xlane.f32.xlu0 %v220_v5  ;;  %v281_v49 = vld [vmem:[%s1142_s2] sm:$0xff] (!%p654_p7)  ;;  %v282_v58 = vld [vmem:[%s1142_s2 + $0x8] sm:$0xff] (!%p654_p7)  ;;  %v284_v59 = vld [vmem:[%s1142_s2 + $0x18] sm:$0xff] (!%p654_p7) }
  0x4b   : > { %250 = vmax.xlane.f32.xlu1 %v220_v5  ;;  %248 = vmax.xlane.f32.xlu0 %v219_v3 }
  0x4f   : > { %254 = vmax.xlane.f32.xlu1 %v222_v4  ;;  %252 = vmax.xlane.f32.xlu0 %v221_v2 }
  0xd0   : > { %v232_v8 = vpop.xlane.xlu1 %231  ;;  %v228_v9 = vpop.xlane.xlu0 %227 }
  0xd1   : > { %v237_v10 = vadd.f32 %v232_v8, %v225_v6  ;;  %v235_v11 = vadd.f32 %v228_v9, %v223_v7 }
  0xd3   : > { %242 = vst.msk [vmem:[#allocation2 + $0x10] sm:$0xff] %vm239_vm1, %v237_v10  ;;  %240 = vst.msk [vmem:[#allocation2] sm:$0xff] %vm239_vm1, %v235_v11 }
  0xd4   : > { %v234_v14 = vpop.xlane.xlu1 %233  ;;  %v230_v15 = vpop.xlane.xlu0 %229 }
  0xd5   : > { %v238_v16 = vadd.f32 %v234_v14, %v226_v12  ;;  %v236_v17 = vadd.f32 %v230_v15, %v224_v13 }
  0xd7   : > { %243 = vst.msk [vmem:[#allocation2 + $0x18] sm:$0xff] %vm239_vm1, %v238_v16  ;;  %241 = vst.msk [vmem:[#allocation2 + $0x8] sm:$0xff] %vm239_vm1, %v236_v17 }
  0xd8   : > { %v251_v20 = vpop.xlane.xlu1 %250  ;;  %v249_v21 = vpop.xlane.xlu0 %248 }
  0xd9   : > { %v257_v22 = vmax.f32 %v245_v18, %v251_v20  ;;  %v256_v23 = vmax.f32 %v244_v19, %v249_v21  ;;  %267 = sbr.rel (%p654_p7) target bundleno = 696 (0x2b8), region = 44 }
  0xda   : > { %v268_v32 = vld [vmem:[#allocation2] sm:$0xff] (!%p654_p7)  ;;  %v270_v40 = vld [vmem:[#allocation2 + $0x10] sm:$0xff] (!%p654_p7) }
  0xdb   : > { %261 = vst.msk [vmem:[#allocation3 + $0x8] sm:$0xff] %vm239_vm1, %v257_v22  ;;  %260 = vst.msk [vmem:[#allocation3] sm:$0xff] %vm239_vm1, %v256_v23  ;;  %v272_v36 = vmul.f32 (!%p654_p7), 0.00390625, %v268_v32  ;;  %v274_v44 = vmul.f32 (!%p654_p7), 0.00390625, %v270_v40 }
  0xdc   : > { %v255_v26 = vpop.xlane.xlu1 %254  ;;  %v253_v27 = vpop.xlane.xlu0 %252 }
  0xdd   : > { %v259_v28 = vmax.f32 %v247_v24, %v255_v26  ;;  %v258_v29 = vmax.f32 %v246_v25, %v253_v27 }
  0xde   : > { %v269_v35 = vld [vmem:[#allocation2 + $0x8] sm:$0xff] (!%p654_p7)  ;;  %v271_v41 = vld [vmem:[#allocation2 + $0x18] sm:$0xff] (!%p654_p7) }
  0xdf   : > { %263 = vst.msk [vmem:[#allocation3 + $0x18] sm:$0xff] %vm239_vm1, %v259_v28  ;;  %262 = vst.msk [vmem:[#allocation3 + $0x10] sm:$0xff] %vm239_vm1, %v258_v29  ;;  %v273_v39 = vmul.f32 (!%p654_p7), 0.00390625, %v269_v35  ;;  %v275_v45 = vmul.f32 (!%p654_p7), 0.00390625, %v271_v41 }
  0xe1   : > { %v715_v46 = vpack.c.bf16 %v273_v39, %v272_v36  ;;  %v718_v47 = vpack.c.bf16 %v275_v45, %v274_v44 }
  0xe2   : > { %v276_v30 = vld [vmem:[#allocation3] sm:$0xff]  ;;  %v277_v31 = vld [vmem:[#allocation3 + $0x8] sm:$0xff] }
  0xe3   : > { %v721_v34 = vpack.c.bf16 %v277_v31, %v276_v30  ;;  %716 = vmatpush3.bf16.msra.mxu0 %v715_v46 }
  0xe4   : > { %717 = vmatprep.subr.bf16.mxu0 %v927_v33 }
  0xe5   : > { %722 = vmatpush3.bf16.msra.mxu1 %v721_v34 }
  0xe6   : > { %v278_v37 = vld [vmem:[#allocation3 + $0x10] sm:$0xff]  ;;  %v279_v38 = vld [vmem:[#allocation3 + $0x18] sm:$0xff]  ;;  %723 = vmatprep.subr.bf16.mxu1 %v927_v33 }
  0xe7   : > { %v724_v43 = vpack.c.bf16 %v279_v38, %v278_v37  ;;  %719 = vmatpush3.bf16.msra.mxu0 %v718_v47 }
  0xe9   : > { %725 = vmatpush3.bf16.msra.mxu1 %v724_v43 }
  0xea   : > { %693 = vmatmul.mubr.msk.f32.vlgmr.msra.gmra.mrb[0].mxu0 %vm285_vm3, %v280_v48 }
  0xeb   : > { %708 = vmatprep.mubr.msk.f32.mxu0 %vm432_vm4, %v281_v49 }
  0xec   : > { %704 = vmatmul.mubr.msk.f32.vlgmr.msra.gmra.mrb[0].mxu1 %vm285_vm3, %v280_v48 }
  0xed   : > { %711 = vmatprep.mubr.msk.f32.mxu1 %vm432_vm4, %v283_v50 }
 0x1bd   : > { %v355_v54 = vpop.f32.mrb[0].mxu0 }
 0x1be   : > { %v359_v55 = vmax.f32 %v355_v54, 0.0  ;;  %v694_v56 = vpop.f32.mrb[1].mxu0 }
 0x1bf   : > { %v426_v51 = vpop.f32.mrb[0].mxu1 }
 0x1c0   : > { %v705_v52 = vpop.f32.mrb[1].mxu1  ;;  %v430_v53 = vmax.f32 %v426_v51, 0.0 }
 0x1c2   : > { %v431_v57 = vadd.f32 %v430_v53, %v359_v55 }
 0x1c4   : > { %706 = vmatprep.subr.msk.mxu0 %vm445_vm5, %v431_v57  ;;  %726 = vmatprep.subr.msk.mxu1 %vm445_vm5, %v431_v57 }
 0x1c5   : > { %707 = vmatpush3.msk.msra.mxu0 %vm445_vm5, %v431_v57  ;;  %727 = vmatpush3.msk.msra.mxu1 %vm445_vm5, %v431_v57 }
 0x1c6   : > { %709 = vmatmul.mubr.msk.f32.vlgmr.msra.gmra.mrb[2].mxu0 %vm432_vm4, %v282_v58  ;;  %712 = vmatmul.mubr.msk.f32.vlgmr.msra.gmra.mrb[2].mxu1 %vm432_vm4, %v284_v59 }
 0x299   : > { %v710_v60 = vpop.f32.mrb[2].mxu0  ;;  %v713_v61 = vpop.f32.mrb[2].mxu1 }
 0x29a   : > { %v663_v62 = vmul.f32 -1.442695, %v710_v60  ;;  %v665_v63 = vmul.f32 -1.442695, %v713_v61  ;;  %v515_v0 = vpop.f32.mrb[3].mxu0  ;;  %v525_v1 = vpop.f32.mrb[3].mxu1 }
 0x29b   : > { %v662_v2 = vmul.f32 -1.442695, %v515_v0  ;;  %v664_v3 = vmul.f32 -1.442695, %v525_v1 }
 0x29c   : > { %807 = vpow2.f32 %v663_v62 }
 0x29d   : > { %809 = vpow2.f32 %v665_v63 }
 0x29e   : > { %811 = vpow2.f32 %v662_v2 }
 0x29f   : > { %813 = vpow2.f32 %v664_v3 }
 0x2a6   : > { %v808_v4 = vpop.eup %807 }
 0x2a7   : > { %v810_v5 = vpop.eup %809  ;;  %v547_v6 = vadd.f32 1.0, %v808_v4 }
 0x2a8   : > { %v812_v7 = vpop.eup %811  ;;  %v549_v8 = vadd.f32 1.0, %v810_v5 }
 0x2a9   : > { %v814_v9 = vpop.eup %813  ;;  %815 = vrcp.f32 %v547_v6  ;;  %v546_v10 = vadd.f32 1.0, %v812_v7 }
 0x2aa   : > { %817 = vrcp.f32 %v549_v8  ;;  %v548_v11 = vadd.f32 1.0, %v814_v9 }
 0x2ab   : > { %819 = vrcp.f32 %v546_v10 }
 0x2ac   : > { %821 = vrcp.f32 %v548_v11 }
 0x2b3   : > { %v816_v12 = vpop.eup %815 }
 0x2b4   : > { %v818_v13 = vpop.eup %817  ;;  %559 = vst.msk [vmem:[%s1077_s23 + $0x8] sm:$0xff] %vm239_vm1, %v816_v12 }
 0x2b5   : > { %v820_v14 = vpop.eup %819  ;;  %561 = vst.msk [vmem:[%s1077_s23 + $0x18] sm:$0xff] %vm239_vm1, %v818_v13 }
 0x2b6   : > { %v822_v15 = vpop.eup %821  ;;  %558 = vst.msk [vmem:[%s1077_s23] sm:$0xff] %vm239_vm1, %v820_v14 }
 0x2b7   : > { %560 = vst.msk [vmem:[%s1077_s23 + $0x10] sm:$0xff] %vm239_vm1, %v822_v15 }
 0x2b8 PF: > { %s16_s19 = sadd.s32 1, %s919_s19   ;;  %s1148_s12 = smov %s895_s13 }
 0x2b9   : > { %p13_p6 = scmp.ge.s32.totalorder %s16_s19, 6   ;;  %s1149_s13 = smov %s899_s14 }
 0x2ba   : > { %s1150_s14 = smov %s1017_s5  ;;  %s1151_s15 = smov %s911_s17 }
 0x2bb   : > { %s1152_s16 = smov %s915_s18  ;;  %s1153_s17 = smov %s1156_s21 }
 0x2bc   : > { %s1154_s18 = smov %s1160_s22  ;;  %15 = sbr.rel (!%p13_p6) target bundleno = 5 (0x5), region = 80 }
 0x2c3   :  { %583 = vsyncpa [#allocation5], 1 }
 0x2c4   :  { %585 = vsyncpa [#allocation5 + $0x1], 1 }

</bundles_post_ra>
